<compile_context>
chip_gen: v5e
topology: v5e:2x2
jax: 0.10.0
libtpu: 0.0.40
codegen_flags: <defaults>
</compile_context>

<pallas_src>
import functools

import jax
import jax.numpy as jnp
from jax.experimental import pallas as pl
from jax.experimental.pallas import tpu as pltpu


def _fused_linear_hardsig_kernel(x_ref, w_ref, b_ref, o_ref):
    # x: (TB, IN), w: (IN, OUT_PAD) pre-transposed -> canonical MXU feed.
    y = jnp.dot(x_ref[...], w_ref[...], preferred_element_type=jnp.float32)
    y = y + b_ref[...]                       # folded bias (1, OUT_PAD), f32
    o_ref[...] = jnp.clip(y, 0.0, 1.0).astype(o_ref.dtype)


def prepare_params(weight, bias, *, lane_pad=128, matmul_dtype=jnp.float32):
    """One-time fold + layout prep (module __init__ time, not per call).

    weight: (OUT, IN) f32 (PyTorch layout), bias: (OUT,) f32.
    Returns:
      w_fold: (IN, OUT_PAD) in `matmul_dtype`  (W/6, transposed, lane-padded with zeros)
      b_fold: (1, OUT_PAD) f32                 ((b+3)/6, lane-padded with zeros)
    """
    inv6 = jnp.float32(1.0 / 6.0)
    w_fold = (weight.astype(jnp.float32) * inv6).T               # (IN, OUT)
    b_fold = ((bias.astype(jnp.float32) + 3.0) * inv6).reshape(1, -1)
    out = w_fold.shape[1]
    out_pad = ((out + lane_pad - 1) // lane_pad) * lane_pad
    if out_pad != out:
        w_fold = jnp.pad(w_fold, ((0, 0), (0, out_pad - out)))
        b_fold = jnp.pad(b_fold, ((0, 0), (0, out_pad - out)))
    # Fold is done in f32; only the matmul operand is (optionally) downcast.
    return w_fold.astype(matmul_dtype), b_fold


@functools.partial(jax.jit, static_argnames=("out_features", "block_b"))
def fused_linear_hardsig(x, w_fold, b_fold, out_features, *, block_b=512):
    """x: (B, IN); w_fold: (IN, OUT_PAD); b_fold: (1, OUT_PAD) f32.

    Returns (B, out_features) f32.
    """
    B, IN = x.shape
    OUT_PAD = w_fold.shape[1]
    x = x.astype(w_fold.dtype)          # match MXU operand dtype (f32 or bf16)
    out_dtype = jnp.float32

    if B <= block_b:
        # Genuinely small: single gridless call, whole arrays resident in VMEM.
        y = pl.pallas_call(
            _fused_linear_hardsig_kernel,
            out_shape=jax.ShapeDtypeStruct((B, OUT_PAD), out_dtype),
            in_specs=[
                pl.BlockSpec(memory_space=pltpu.MemorySpace.VMEM),
                pl.BlockSpec(memory_space=pltpu.MemorySpace.VMEM),
                pl.BlockSpec(memory_space=pltpu.MemorySpace.VMEM),
            ],
            out_specs=pl.BlockSpec(memory_space=pltpu.MemorySpace.VMEM),
        )(x, w_fold, b_fold)
    else:
        # Batched: 1-D grid over batch, weight/bias stay VMEM-resident across steps.
        tb = block_b
        grid = (pl.cdiv(B, tb),)
        y = pl.pallas_call(
            _fused_linear_hardsig_kernel,
            out_shape=jax.ShapeDtypeStruct((B, OUT_PAD), out_dtype),
            grid_spec=pltpu.PrefetchScalarGridSpec(
                num_scalar_prefetch=0,
                grid=grid,
                in_specs=[
                    pl.BlockSpec((tb, IN), lambda i: (i, 0)),
                    pl.BlockSpec((IN, OUT_PAD), lambda i: (0, 0)),   # invariant: no re-DMA
                    pl.BlockSpec((1, OUT_PAD), lambda i: (0, 0)),    # invariant: no re-DMA
                ],
                out_specs=pl.BlockSpec((tb, OUT_PAD), lambda i: (i, 0)),
            ),
            compiler_params=pltpu.CompilerParams(
                dimension_semantics=("parallel",)),   # 2x on v7x dual-TC
        )(x, w_fold, b_fold)

    return y[:, :out_features]


if __name__ == "__main__":
    key = jax.random.PRNGKey(0)
    k_x, k_w, k_b, k_xb = jax.random.split(key, 4)

    IN_FEATURES = 64
    OUT_FEATURES = 64
    BATCH = 1

    # Deterministic parameter init mimicking torch.nn.Linear default
    # (uniform in [-1/sqrt(in_features), 1/sqrt(in_features)]).
    bound = 1.0 / jnp.sqrt(jnp.float32(IN_FEATURES))
    weight = jax.random.uniform(
        k_w, (OUT_FEATURES, IN_FEATURES), jnp.float32, -bound, bound)
    bias = jax.random.uniform(
        k_b, (OUT_FEATURES,), jnp.float32, -bound, bound)

    # --- module-shaped case: x1 = (1, 64), gridless whole-VMEM kernel ---
    x1 = jax.random.normal(k_x, (BATCH, IN_FEATURES), jnp.float32)
    w_fold, b_fold = prepare_params(weight, bias)          # f32 exact path
    out = fused_linear_hardsig(x1, w_fold, b_fold, OUT_FEATURES)
    out = jax.block_until_ready(out)

    ref = jnp.clip(x1 @ weight.T + bias + 3.0, 0.0, 6.0) / 6.0
    assert out.shape == (BATCH, OUT_FEATURES)
    assert jnp.allclose(out, ref, atol=1e-5, rtol=1e-5)

    # --- batched case: grid over batch, VMEM-resident weight, parallel axis ---
    BB = 512
    xb = jax.random.normal(k_xb, (BB, IN_FEATURES), jnp.float32)
    out_b = fused_linear_hardsig(xb, w_fold, b_fold, OUT_FEATURES, block_b=128)
    out_b = jax.block_until_ready(out_b)
    ref_b = jnp.clip(xb @ weight.T + bias + 3.0, 0.0, 6.0) / 6.0
    assert out_b.shape == (BB, OUT_FEATURES)
    assert jnp.allclose(out_b, ref_b, atol=1e-5, rtol=1e-5)

    # --- bf16 matmul operands (v6e/v7x MXU-native), bias/clip still f32 ---
    w_bf, b_f32 = prepare_params(weight, bias, matmul_dtype=jnp.bfloat16)
    out_bf = fused_linear_hardsig(xb, w_bf, b_f32, OUT_FEATURES, block_b=128)
    out_bf = jax.block_until_ready(out_bf)
    assert jnp.allclose(out_bf, ref_b, atol=2e-2, rtol=2e-2)

    print("KERNEL_OK")
</pallas_src>

<mosaic_0001>
module attributes {stable_mosaic.version = 11 : i64} {
  func.func @_fused_linear_hardsig_kernel(%arg0: memref<1x64xf32, #tpu.memory_space<vmem>>, %arg1: memref<64x128xf32, #tpu.memory_space<vmem>>, %arg2: memref<1x128xf32, #tpu.memory_space<vmem>>, %arg3: memref<1x128xf32, #tpu.memory_space<vmem>>) attributes {dimension_semantics = [], scalar_prefetch = 0 : i64, scratch_operands = 0 : i64, tpu.core_type = #tpu.core_type<tc>} {
    %c0 = arith.constant 0 : index
    %c0_0 = arith.constant 0 : index
    %0 = vector.load %arg0[%c0, %c0_0] : memref<1x64xf32, #tpu.memory_space<vmem>>, vector<1x64xf32>
    %c0_1 = arith.constant 0 : index
    %c0_2 = arith.constant 0 : index
    %1 = vector.load %arg1[%c0_1, %c0_2] : memref<64x128xf32, #tpu.memory_space<vmem>>, vector<64x128xf32>
    %cst = arith.constant dense<0.000000e+00> : vector<1x128xf32>
    %2 = tpu.matmul %0, %1, %cst {dimension_numbers = #tpu.dot_dimension_numbers<[1], [0], [0], [1], [0, 0, 1, 1], [], []>} : vector<1x64xf32>, vector<64x128xf32>, vector<1x128xf32> -> vector<1x128xf32>
    %c0_3 = arith.constant 0 : index
    %c0_4 = arith.constant 0 : index
    %3 = vector.load %arg2[%c0_3, %c0_4] : memref<1x128xf32, #tpu.memory_space<vmem>>, vector<1x128xf32>
    %4 = arith.addf %2, %3 : vector<1x128xf32>
    %cst_5 = arith.constant 0.000000e+00 : f32
    %cst_6 = arith.constant 1.000000e+00 : f32
    %5 = vector.broadcast %cst_5 : f32 to vector<1x128xf32>
    %6 = arith.maximumf %5, %4 : vector<1x128xf32>
    %7 = vector.broadcast %cst_6 : f32 to vector<1x128xf32>
    %8 = arith.minimumf %7, %6 : vector<1x128xf32>
    %c0_7 = arith.constant 0 : index
    %c0_8 = arith.constant 0 : index
    %9 = vector.load %arg3[%c0_7, %c0_8] : memref<1x128xf32, #tpu.memory_space<vmem>>, vector<1x128xf32>
    tpu.vector_store %arg3[%c0_7, %c0_8], %8 {strides = array<i32>} : memref<1x128xf32, #tpu.memory_space<vmem>>, vector<1x128xf32>,
    return
  }
}

</mosaic_0001>

<bundles_post_ra>
// kernel: fused_linear_hardsig.1
= control target key start
LH: loop header
LB: loop body
LE: loop exit
PB: predicated region body
PF: predicated region fallthrough
CT: control target
= control target key end

     0   :  { %8 = vsyncpa [#allocation3], 0  ;;  %s221_s0 = inlined_call_operand.hbm [shape: f32[1,64], index: 0, kind: input, shape index: {}]   ;;  %s222_s1 = inlined_call_operand.hbm [shape: f32[64,128], index: 1, kind: input, shape index: {}]   ;;  %s223_s2 = inlined_call_operand.vmem [shape: f32[1,128], index: 2, kind: input, shape index: {}]   ;;  %s224_s3 = inlined_call_operand.hbm [shape: f32[1,128], index: 3, kind: output, shape index: {}]  }
   0x1   :  { %9 = vsyncpa [#allocation6], 0 }
   0x2   :  { %10 = vsyncpa [#allocation4], 0  ;;  %s16_s14 = sshll.u32 %s221_s0, 4  ;;  %s184_s15 = smov [#allocation2]   ;;  %s17_s14 = int_to_ptr.hbm [resolvable:$true] %s16_s14 }
   0x3   :  { %s18_s16 = sshll.u32 %s184_s15, 4  ;;  %s26_s19 = sshll.u32 %s222_s1, 4  ;;  %s19_s16 = int_to_ptr.vmem [resolvable:$true] %s18_s16  ;;  %s27_s19 = int_to_ptr.hbm [resolvable:$true] %s26_s19 }
   0x4   :  { %21 = dma.hbm_to_vmem [thread:$0]  %s17_s14, 16, %s19_s16, [#allocation3]  }
   0x5   :  { %s185_s20 = smov [#allocation5]   ;;  %s186_s22 = smov 128  }
   0x6   :  { %s28_s21 = sshll.u32 %s185_s20, 4  ;;  %s187_s23 = smov 8   ;;  %s29_s21 = int_to_ptr.vmem [resolvable:$true] %s28_s21 }
   0x7   :  { %34 = dma.hbm_to_vmem [thread:$0]  %s27_s19, 1024, %s29_s21, [#allocation6], %s186_s22, %s186_s22, %s187_s23  }
   0x8   :  { %178 = dma.done.wait [#allocation3], 16  }
   0x9   :  { %179 = vsyncadd [#allocation3], 4294967280 }
   0xa   :  { %180 = dma.done.wait [#allocation6], 1024  }
   0xb   :  { %181 = vsyncadd [#allocation6], 4294966272  ;;  %v53_v0 = vld [vmem:[#allocation5 + $0x38] sm:$0xff]  ;;  %v52_v1 = vld [vmem:[#allocation5 + $0x30] sm:$0xff]  ;;  %vm55_vm0 = vcmask 523264   ;;  %s188_s24 = smov [#allocation7]  }
   0xc   :  { %67 = vmatpush.msra.mxu0 %v53_v0  ;;  %v51_v2 = vld [vmem:[#allocation5 + $0x28] sm:$0xff]  ;;  %v50_v3 = vld [vmem:[#allocation5 + $0x20] sm:$0xff]  ;;  %v49_v4 = vld [vmem:[#allocation5 + $0x18] sm:$0xff]  ;;  %s87_s25 = sshll.u32 %s188_s24, 4  ;;  %s89_s28 = sshll.u32 %s224_s3, 4  ;;  %s88_s25 = int_to_ptr.vmem [resolvable:$true] %s87_s25  ;;  %s90_s28 = int_to_ptr.hbm [resolvable:$true] %s89_s28 }
   0xd   :  { %v48_v5 = vld [vmem:[#allocation5 + $0x10] sm:$0xff]  ;;  %v47_v6 = vld [vmem:[#allocation5 + $0x8] sm:$0xff]  ;;  %v46_v7 = vld [vmem:[#allocation5] sm:$0xff] }
   0xe   :  { %68 = vmatpush.msra.mxu0 %v52_v1  ;;  %v45_v8 = vld [vmem:[#allocation2] sm:$0x1] }
   0xf   :  { %v54_v9 = vld [vmem:[%s223_s2] sm:$0x1] }
  0x10   :  { %69 = vmatpush.msra.mxu0 %v51_v2 }
  0x12   :  { %70 = vmatpush.msra.mxu0 %v50_v3 }
  0x14   :  { %71 = vmatpush.msra.mxu0 %v49_v4 }
  0x16   :  { %72 = vmatpush.msra.mxu0 %v48_v5 }
  0x18   :  { %73 = vmatpush.msra.mxu0 %v47_v6 }
  0x1a   :  { %74 = vmatpush.msra.mxu0 %v46_v7 }
  0x1b   :  { %100 = vmatmul.msk.f32.vlgmr.msra.gmra.mxu0 %vm55_vm0, %v45_v8 }
  0x98   :  { %v76_v10 = vpop.f32.mrf.mxu0 }
  0x99   :  { %v77_v11 = vadd.f32 %v76_v10, %v54_v9 }
  0x9b   :  { %v79_v12 = vmax.f32 %v77_v11, 0.0 }
  0x9d   :  { %v80_v13 = vmin.f32 %v79_v12, 1.0 }
  0x9f   :  { %81 = vst [vmem:[#allocation7] sm:$0x1] %v80_v13 }
  0xa0   :  { %92 = dma.vmem_to_hbm [thread:$0]  %s88_s25, 16, %s90_s28, [#allocation4]  }
  0xa1   :  { %182 = dma.done.wait [#allocation4], 16  }
  0xa2   :  { %183 = vsyncadd [#allocation4], 4294967280 }
  0xa3   :  { %97 = vsyncpa [#allocation3], 1 }
  0xa4   :  { %98 = vsyncpa [#allocation6], 1 }
  0xa5   :  { %99 = vsyncpa [#allocation4], 1 }

</bundles_post_ra>
